<compile_context>
chip_gen: v7x
topology: tpu7x:2x2x1
jax: 0.10.0
libtpu: 0.0.40
codegen_flags: <defaults>
</compile_context>

<pallas_src>
import functools

import jax
import jax.numpy as jnp
from jax.experimental import pallas as pl
from jax.experimental.pallas import tpu as pltpu


def _eye(rows, cols, dtype):
    """(rows, cols) identity-like matrix from 2-D iotas (TPU-friendly)."""
    r = jax.lax.broadcasted_iota(jnp.int32, (rows, cols), 0)
    c = jax.lax.broadcasted_iota(jnp.int32, (rows, cols), 1)
    return (r == c).astype(dtype)


def _permute_conv2d_kernel(x_ref, w_ref, b_ref, o_ref, *,
                           C_out, C_in, KH, KW, H, W):
    """Fused permute(0,2,1) + direct Conv2d (stride 1, VALID), unbatched.

    x_ref : VMEM (C_in, W, H)          -- raw, un-permuted x1
    w_ref : SMEM (C_out*C_in*KH*KW,)   -- flattened Conv2d weight
    b_ref : SMEM (C_out,)              -- Conv2d bias
    o_ref : VMEM (C_out, H_out, W_out) -- exact output (no lane padding)
    """
    H_out = H - KH + 1
    W_out = W - KW + 1
    f32 = jnp.float32

    # Hoist every scalar weight load once (no per-tap SMEM read / rebroadcast).
    wv = [w_ref[i] for i in range(C_out * C_in * KH * KW)]

    # Hoist the C_in*KH*KW distinct tap slices once; they are shared by every
    # output channel.  Taps come straight from the raw (W, H)-oriented input,
    # so the permute costs nothing here:
    #   taps[ci][kh][kw][w, h] == x1[ci, w + kw, h + kh] == xp[ci, h + kh, w + kw]
    taps = [[[x_ref[ci, kw:kw + W_out, kh:kh + H_out]
              for kw in range(KW)]
             for kh in range(KH)]
            for ci in range(C_in)]

    # (W_out, W_out) identity: one dot_general per output channel both applies
    # the permute (transpose) and lands the accumulator in output orientation.
    eye_w = _eye(W_out, W_out, f32)
    dn_t = (((0,), (0,)), ((), ()))   # contract acc dim 0 with eye dim 0 => transpose

    for co in range(C_out):
        # Accumulate in (W_out, H_out) orientation, initialized directly with bias.
        acc = jnp.full((W_out, H_out), b_ref[co], f32)
        for ci in range(C_in):
            for kh in range(KH):
                for kw in range(KW):
                    w_tap = wv[((co * C_in + ci) * KH + kh) * KW + kw]
                    acc = acc + taps[ci][kh][kw] * w_tap
        # Single tiny MXU op per channel: (W_out, H_out) -> (H_out, W_out).
        out_co = jax.lax.dot_general(acc, eye_w, dn_t, preferred_element_type=f32)
        o_ref[co, :, :] = out_co.astype(o_ref.dtype)


@jax.jit
def model_forward(x1, weight, bias):
    """Pallas equivalent of: v1 = x1.permute(0, 2, 1); v1 = Conv2d(C_in,C_out,K)(v1)."""
    C_out, C_in, KH, KW = weight.shape
    assert x1.ndim == 3 and x1.shape[0] == C_in, \
        "permuted channel dim must equal in_channels"
    _, W, H = x1.shape                       # permuted tensor is (C_in, H, W)
    H_out, W_out = H - KH + 1, W - KW + 1
    assert H_out >= 1 and W_out >= 1, "kernel larger than (permuted) input"
    # Grid-less single-block design: whole problem must sit comfortably in VMEM.
    assert 4 * (x1.size + C_out * H_out * W_out + W_out * W_out) < (4 << 20), \
        "input too large for the single-block (grid-less) kernel"

    kernel = functools.partial(
        _permute_conv2d_kernel, C_out=C_out, C_in=C_in, KH=KH, KW=KW, H=H, W=W)

    # Conv MACs + the tiny per-channel transpose matmul.
    flops = (2 * C_out * C_in * KH * KW * H_out * W_out
             + 2 * C_out * H_out * W_out * W_out)
    bytes_accessed = 4 * (x1.size + weight.size + bias.size
                          + C_out * H_out * W_out)

    return pl.pallas_call(
        kernel,
        out_shape=jax.ShapeDtypeStruct((C_out, H_out, W_out), x1.dtype),
        in_specs=[
            pl.BlockSpec(memory_space=pltpu.MemorySpace.VMEM),   # x1 (full block)
            pl.BlockSpec(memory_space=pltpu.MemorySpace.SMEM),   # flat weights
            pl.BlockSpec(memory_space=pltpu.MemorySpace.SMEM),   # bias
        ],
        out_specs=pl.BlockSpec(memory_space=pltpu.MemorySpace.VMEM),
        cost_estimate=pl.CostEstimate(flops=flops, transcendentals=0,
                                      bytes_accessed=bytes_accessed),
    )(x1, weight.reshape(-1), bias)


def _reference(x1, weight, bias):
    """Pure-JAX reference (lax conv) for correctness checking."""
    xp = jnp.transpose(x1, (0, 2, 1))[None]    # (1, C_in, H, W)
    out = jax.lax.conv_general_dilated(
        xp, weight, window_strides=(1, 1), padding="VALID",
        dimension_numbers=("NCHW", "OIHW", "NCHW"))
    return out[0] + bias[:, None, None]


if __name__ == "__main__":
    key = jax.random.PRNGKey(0)
    k_x, k_w, k_b = jax.random.split(key, 3)

    # Conv2d(in_channels=2, out_channels=2, kernel_size=2)
    C_in, C_out, K = 2, 2, 2
    weight = jax.random.normal(k_w, (C_out, C_in, K, K), dtype=jnp.float32) * 0.2
    bias = jax.random.normal(k_b, (C_out,), dtype=jnp.float32) * 0.1

    # input: (A, B, C) with A == in_channels so the permuted tensor is a valid
    # unbatched Conv2d input (C_in=2, H=16, W=16)
    x1 = jax.random.normal(k_x, (2, 16, 16), dtype=jnp.float32)

    out = model_forward(x1, weight, bias)
    out = jax.block_until_ready(out)

    ref = _reference(x1, weight, bias)
    assert out.shape == ref.shape == (2, 15, 15), out.shape
    assert jnp.allclose(out, ref, atol=1e-5, rtol=1e-5), "mismatch vs reference"

    print("KERNEL_OK")
</pallas_src>

<mosaic_0001>
module attributes {stable_mosaic.version = 11 : i64} {
  func.func @_permute_conv2d_kernel(%arg0: memref<2x16x16xf32, #tpu.memory_space<vmem>>, %arg1: memref<16xf32, #tpu.memory_space<smem>>, %arg2: memref<2xf32, #tpu.memory_space<smem>>, %arg3: memref<2x15x15xf32, #tpu.memory_space<vmem>>) attributes {dimension_semantics = [], scalar_prefetch = 0 : i64, scratch_operands = 0 : i64, tpu.core_type = #tpu.core_type<tc>} {
    %c0 = arith.constant 0 : index
    %0 = memref.load %arg1[%c0] : memref<16xf32, #tpu.memory_space<smem>>
    %c1 = arith.constant 1 : index
    %1 = memref.load %arg1[%c1] : memref<16xf32, #tpu.memory_space<smem>>
    %c2 = arith.constant 2 : index
    %2 = memref.load %arg1[%c2] : memref<16xf32, #tpu.memory_space<smem>>
    %c3 = arith.constant 3 : index
    %3 = memref.load %arg1[%c3] : memref<16xf32, #tpu.memory_space<smem>>
    %c4 = arith.constant 4 : index
    %4 = memref.load %arg1[%c4] : memref<16xf32, #tpu.memory_space<smem>>
    %c5 = arith.constant 5 : index
    %5 = memref.load %arg1[%c5] : memref<16xf32, #tpu.memory_space<smem>>
    %c6 = arith.constant 6 : index
    %6 = memref.load %arg1[%c6] : memref<16xf32, #tpu.memory_space<smem>>
    %c7 = arith.constant 7 : index
    %7 = memref.load %arg1[%c7] : memref<16xf32, #tpu.memory_space<smem>>
    %c8 = arith.constant 8 : index
    %8 = memref.load %arg1[%c8] : memref<16xf32, #tpu.memory_space<smem>>
    %c9 = arith.constant 9 : index
    %9 = memref.load %arg1[%c9] : memref<16xf32, #tpu.memory_space<smem>>
    %c10 = arith.constant 10 : index
    %10 = memref.load %arg1[%c10] : memref<16xf32, #tpu.memory_space<smem>>
    %c11 = arith.constant 11 : index
    %11 = memref.load %arg1[%c11] : memref<16xf32, #tpu.memory_space<smem>>
    %c12 = arith.constant 12 : index
    %12 = memref.load %arg1[%c12] : memref<16xf32, #tpu.memory_space<smem>>
    %c13 = arith.constant 13 : index
    %13 = memref.load %arg1[%c13] : memref<16xf32, #tpu.memory_space<smem>>
    %c14 = arith.constant 14 : index
    %14 = memref.load %arg1[%c14] : memref<16xf32, #tpu.memory_space<smem>>
    %c15 = arith.constant 15 : index
    %15 = memref.load %arg1[%c15] : memref<16xf32, #tpu.memory_space<smem>>
    %c0_0 = arith.constant 0 : index
    %c0_1 = arith.constant 0 : index
    %c0_2 = arith.constant 0 : index
    %16 = vector.load %arg0[%c0_0, %c0_1, %c0_2] : memref<2x16x16xf32, #tpu.memory_space<vmem>>, vector<1x15x15xf32>
    %17 = vector.shape_cast %16 : vector<1x15x15xf32> to vector<15x15xf32>
    %c0_3 = arith.constant 0 : index
    %c1_4 = arith.constant 1 : index
    %c0_5 = arith.constant 0 : index
    %18 = vector.load %arg0[%c0_3, %c1_4, %c0_5] : memref<2x16x16xf32, #tpu.memory_space<vmem>>, vector<1x15x15xf32>
    %19 = vector.shape_cast %18 : vector<1x15x15xf32> to vector<15x15xf32>
    %c0_6 = arith.constant 0 : index
    %c0_7 = arith.constant 0 : index
    %c1_8 = arith.constant 1 : index
    %20 = vector.load %arg0[%c0_6, %c0_7, %c1_8] : memref<2x16x16xf32, #tpu.memory_space<vmem>>, vector<1x15x15xf32>
    %21 = vector.shape_cast %20 : vector<1x15x15xf32> to vector<15x15xf32>
    %c0_9 = arith.constant 0 : index
    %c1_10 = arith.constant 1 : index
    %c1_11 = arith.constant 1 : index
    %22 = vector.load %arg0[%c0_9, %c1_10, %c1_11] : memref<2x16x16xf32, #tpu.memory_space<vmem>>, vector<1x15x15xf32>
    %23 = vector.shape_cast %22 : vector<1x15x15xf32> to vector<15x15xf32>
    %c1_12 = arith.constant 1 : index
    %c0_13 = arith.constant 0 : index
    %c0_14 = arith.constant 0 : index
    %24 = vector.load %arg0[%c1_12, %c0_13, %c0_14] : memref<2x16x16xf32, #tpu.memory_space<vmem>>, vector<1x15x15xf32>
    %25 = vector.shape_cast %24 : vector<1x15x15xf32> to vector<15x15xf32>
    %c1_15 = arith.constant 1 : index
    %c1_16 = arith.constant 1 : index
    %c0_17 = arith.constant 0 : index
    %26 = vector.load %arg0[%c1_15, %c1_16, %c0_17] : memref<2x16x16xf32, #tpu.memory_space<vmem>>, vector<1x15x15xf32>
    %27 = vector.shape_cast %26 : vector<1x15x15xf32> to vector<15x15xf32>
    %c1_18 = arith.constant 1 : index
    %c0_19 = arith.constant 0 : index
    %c1_20 = arith.constant 1 : index
    %28 = vector.load %arg0[%c1_18, %c0_19, %c1_20] : memref<2x16x16xf32, #tpu.memory_space<vmem>>, vector<1x15x15xf32>
    %29 = vector.shape_cast %28 : vector<1x15x15xf32> to vector<15x15xf32>
    %c1_21 = arith.constant 1 : index
    %c1_22 = arith.constant 1 : index
    %c1_23 = arith.constant 1 : index
    %30 = vector.load %arg0[%c1_21, %c1_22, %c1_23] : memref<2x16x16xf32, #tpu.memory_space<vmem>>, vector<1x15x15xf32>
    %31 = vector.shape_cast %30 : vector<1x15x15xf32> to vector<15x15xf32>
    %32 = tpu.iota {dimensions = array<i32: 0>} : vector<15x15xi32>
    %33 = tpu.iota {dimensions = array<i32: 1>} : vector<15x15xi32>
    %34 = arith.cmpi eq, %32, %33 : vector<15x15xi32>
    %35 = arith.extui %34 : vector<15x15xi1> to vector<15x15xi32>
    %36 = arith.sitofp %35 : vector<15x15xi32> to vector<15x15xf32>
    %c0_24 = arith.constant 0 : index
    %37 = memref.load %arg2[%c0_24] : memref<2xf32, #tpu.memory_space<smem>>
    %38 = vector.broadcast %37 : f32 to vector<15x15xf32>
    %39 = vector.broadcast %0 : f32 to vector<15x15xf32>
    %40 = arith.mulf %17, %39 : vector<15x15xf32>
    %41 = arith.addf %38, %40 : vector<15x15xf32>
    %42 = vector.broadcast %1 : f32 to vector<15x15xf32>
    %43 = arith.mulf %19, %42 : vector<15x15xf32>
    %44 = arith.addf %41, %43 : vector<15x15xf32>
    %45 = vector.broadcast %2 : f32 to vector<15x15xf32>
    %46 = arith.mulf %21, %45 : vector<15x15xf32>
    %47 = arith.addf %44, %46 : vector<15x15xf32>
    %48 = vector.broadcast %3 : f32 to vector<15x15xf32>
    %49 = arith.mulf %23, %48 : vector<15x15xf32>
    %50 = arith.addf %47, %49 : vector<15x15xf32>
    %51 = vector.broadcast %4 : f32 to vector<15x15xf32>
    %52 = arith.mulf %25, %51 : vector<15x15xf32>
    %53 = arith.addf %50, %52 : vector<15x15xf32>
    %54 = vector.broadcast %5 : f32 to vector<15x15xf32>
    %55 = arith.mulf %27, %54 : vector<15x15xf32>
    %56 = arith.addf %53, %55 : vector<15x15xf32>
    %57 = vector.broadcast %6 : f32 to vector<15x15xf32>
    %58 = arith.mulf %29, %57 : vector<15x15xf32>
    %59 = arith.addf %56, %58 : vector<15x15xf32>
    %60 = vector.broadcast %7 : f32 to vector<15x15xf32>
    %61 = arith.mulf %31, %60 : vector<15x15xf32>
    %62 = arith.addf %59, %61 : vector<15x15xf32>
    %cst = arith.constant dense<0.000000e+00> : vector<15x15xf32>
    %63 = tpu.matmul %62, %36, %cst {dimension_numbers = #tpu.dot_dimension_numbers<[0], [0], [1], [1], [0, 1, 1, 1], [], []>} : vector<15x15xf32>, vector<15x15xf32>, vector<15x15xf32> -> vector<15x15xf32>
    %c0_25 = arith.constant 0 : index
    %c0_26 = arith.constant 0 : index
    %c0_27 = arith.constant 0 : index
    %64 = vector.load %arg3[%c0_25, %c0_26, %c0_27] : memref<2x15x15xf32, #tpu.memory_space<vmem>>, vector<1x15x15xf32>
    %65 = vector.shape_cast %64 : vector<1x15x15xf32> to vector<15x15xf32>
    %66 = vector.shape_cast %63 : vector<15x15xf32> to vector<1x15x15xf32>
    tpu.vector_store %arg3[%c0_25, %c0_26, %c0_27], %66 {strides = array<i32>} : memref<2x15x15xf32, #tpu.memory_space<vmem>>, vector<1x15x15xf32>,
    %c1_28 = arith.constant 1 : index
    %67 = memref.load %arg2[%c1_28] : memref<2xf32, #tpu.memory_space<smem>>
    %68 = vector.broadcast %67 : f32 to vector<15x15xf32>
    %69 = vector.broadcast %8 : f32 to vector<15x15xf32>
    %70 = arith.mulf %17, %69 : vector<15x15xf32>
    %71 = arith.addf %68, %70 : vector<15x15xf32>
    %72 = vector.broadcast %9 : f32 to vector<15x15xf32>
    %73 = arith.mulf %19, %72 : vector<15x15xf32>
    %74 = arith.addf %71, %73 : vector<15x15xf32>
    %75 = vector.broadcast %10 : f32 to vector<15x15xf32>
    %76 = arith.mulf %21, %75 : vector<15x15xf32>
    %77 = arith.addf %74, %76 : vector<15x15xf32>
    %78 = vector.broadcast %11 : f32 to vector<15x15xf32>
    %79 = arith.mulf %23, %78 : vector<15x15xf32>
    %80 = arith.addf %77, %79 : vector<15x15xf32>
    %81 = vector.broadcast %12 : f32 to vector<15x15xf32>
    %82 = arith.mulf %25, %81 : vector<15x15xf32>
    %83 = arith.addf %80, %82 : vector<15x15xf32>
    %84 = vector.broadcast %13 : f32 to vector<15x15xf32>
    %85 = arith.mulf %27, %84 : vector<15x15xf32>
    %86 = arith.addf %83, %85 : vector<15x15xf32>
    %87 = vector.broadcast %14 : f32 to vector<15x15xf32>
    %88 = arith.mulf %29, %87 : vector<15x15xf32>
    %89 = arith.addf %86, %88 : vector<15x15xf32>
    %90 = vector.broadcast %15 : f32 to vector<15x15xf32>
    %91 = arith.mulf %31, %90 : vector<15x15xf32>
    %92 = arith.addf %89, %91 : vector<15x15xf32>
    %cst_29 = arith.constant dense<0.000000e+00> : vector<15x15xf32>
    %93 = tpu.matmul %92, %36, %cst_29 {dimension_numbers = #tpu.dot_dimension_numbers<[0], [0], [1], [1], [0, 1, 1, 1], [], []>} : vector<15x15xf32>, vector<15x15xf32>, vector<15x15xf32> -> vector<15x15xf32>
    %c1_30 = arith.constant 1 : index
    %c0_31 = arith.constant 0 : index
    %c0_32 = arith.constant 0 : index
    %94 = vector.load %arg3[%c1_30, %c0_31, %c0_32] : memref<2x15x15xf32, #tpu.memory_space<vmem>>, vector<1x15x15xf32>
    %95 = vector.shape_cast %94 : vector<1x15x15xf32> to vector<15x15xf32>
    %96 = vector.shape_cast %93 : vector<15x15xf32> to vector<1x15x15xf32>
    tpu.vector_store %arg3[%c1_30, %c0_31, %c0_32], %96 {strides = array<i32>} : memref<2x15x15xf32, #tpu.memory_space<vmem>>, vector<1x15x15xf32>,
    return
  }
}

</mosaic_0001>

<bundles_post_ra>
// kernel: model_forward.1
= control target key start
LH: loop header
LB: loop body
LE: loop exit
PB: predicated region body
PF: predicated region fallthrough
CT: control target
= control target key end

     0   :  { %8 = vsyncpa [#allocation3], 0  ;;  %s713_s0 = inlined_call_operand.hbm [shape: f32[2,16,16], index: 0, kind: input, shape index: {}]   ;;  %s714_s1 = inlined_call_operand.vmem [shape: f32[16], index: 1, kind: input, shape index: {}]   ;;  %s715_s2 = inlined_call_operand.vmem [shape: f32[2], index: 2, kind: input, shape index: {}]   ;;  %s716_s3 = inlined_call_operand.vmem [shape: f32[2,15,15], index: 3, kind: output, shape index: {}]  }
   0x1   :  { %9 = vsyncpa [#allocation4], 0 }
   0x2   :  { %10 = vsyncpa [#allocation7], 0  ;;  %s603_s12 = smov [#allocation2]   ;;  %s29_s16 = sshll.u32 %s714_s1, 4  ;;  %s30_s16 = int_to_ptr.vmem [resolvable:$true] %s29_s16 }
   0x3   :  { %s16_s13 = sshll.u32 %s603_s12, 4  ;;  %s551_s19 = scalar_lea.hbm %s713_s0, 512  ;;  %s17_s13 = int_to_ptr.vmem [resolvable:$true] %s16_s13 }
   0x4   :  { %p552_p0 = scmp.ne.s32.totalorder %s713_s0, %s551_s19  ;;  %p555_p1 = scmp.lt.u32.totalorder %s551_s19, %s713_s0 }
   0x6   :  { %p557_p2 = pnand %p555_p1, %p552_p0 }
   0x8   :  { %560 = shalt.err (!%p557_p2)
}
   0x9   :  { %s561_s24 = scalar_lea.vmem %s17_s13, 512  ;;  %p566_p4 = scmp.lt.s32.totalorder %s17_s13, %s17_s13 }
   0xa   :  { %p562_p3 = scmp.ne.s32.totalorder %s17_s13, %s561_s24  ;;  %p567_p5 = scmp.lt.s32.totalorder %s561_s24, %s561_s24 }
   0xc   :  { %p568_p6 = por %p567_p5, %p566_p4 }
   0xe   :  { %p569_p7 = pnand %p568_p6, %p562_p3 }
  0x10   :  { %572 = shalt.err (!%p569_p7)
}
  0x11   :  { %s604_s1 = smov 128   ;;  %s605_s25 = smov 8  }
  0x12   :  { %22 = dma.hbm_to_vmem [thread:$0]  %s713_s0, 512, %s17_s13, [#allocation3], %s604_s1, %s604_s1, %s605_s25  }
  0x13   :  { %s573_s28 = scalar_lea.vmem %s30_s16, 16  ;;  %p578_p9 = scmp.lt.s32.totalorder %s30_s16, %s30_s16 }
  0x14   :  { %p574_p8 = scmp.ne.s32.totalorder %s30_s16, %s573_s28  ;;  %p579_p10 = scmp.lt.s32.totalorder %s573_s28, %s573_s28 }
  0x16   :  { %p580_p11 = por %p579_p10, %p578_p9 }
  0x18   :  { %p581_p12 = pnand %p580_p11, %p574_p8 }
  0x1a   :  { %584 = shalt.err (!%p581_p12)
}
  0x1b   :  { %s606_s29 = smov [#allocation5]   ;;  %s39_s5 = sshll.u32 %s715_s2, 4  ;;  %s40_s5 = int_to_ptr.vmem [resolvable:$true] %s39_s5 }
  0x1c   :  { %32 = dma.vmem_to_smem %s30_s16, 16, %s606_s29, [#allocation4]  }
  0x1d   :  { %s585_s6 = scalar_lea.vmem %s40_s5, 16  ;;  %p590_p0 = scmp.lt.s32.totalorder %s40_s5, %s40_s5 }
  0x1e   :  { %p586_p13 = scmp.ne.s32.totalorder %s40_s5, %s585_s6  ;;  %p591_p1 = scmp.lt.s32.totalorder %s585_s6, %s585_s6 }
  0x20   :  { %p592_p2 = por %p591_p1, %p590_p0 }
  0x22   :  { %p593_p3 = pnand %p592_p2, %p586_p13 }
  0x24   :  { %596 = shalt.err (!%p593_p3)
}
  0x25   :  { %s607_s0 = smov [#allocation6]  }
  0x26   :  { %42 = dma.vmem_to_smem %s40_s5, 16, %s607_s0, [#allocation7]  }
  0x27   :  { %597 = dma.done.wait [#allocation3], 512  }
  0x28   :  { %598 = vsyncadd [#allocation3], 4294966784 }
  0x29   :  { %599 = dma.done.wait [#allocation4], 16  }
  0x2a   :  { %600 = vsyncadd [#allocation4], 4294967280 }
  0x2b   :  { %601 = dma.done.wait [#allocation7], 16  }
  0x2c   :  { %602 = vsyncadd [#allocation7], 4294967280 }
  0x2d   :  { %52 = sfence }
  0x2e   :  { %s482_s7 = sld [smem:[#allocation5 + $0x2]]  ;;  %s649_s8 = sld [smem:[#allocation5 + $0x3]]  ;;  %v70_v0 = vld [vmem:[#allocation2 + $0x8] sm:$0x7f]  ;;  %v69_v1 = vld [vmem:[#allocation2] sm:$0xff]  ;;  %v74_v33 = vld [vmem:[#allocation2 + $0x10] sm:$0xff] }
  0x2f   :  { %s490_s2 = sld [smem:[#allocation5 + $0xa]]  ;;  %s651_s9 = sld [smem:[#allocation5 + $0xb]]  ;;  %v71_v3 = vld [vmem:[#allocation2 + $0x1] sm:$0xff]  ;;  %v72_v11 = vld [vmem:[#allocation2 + $0x9] sm:$0x7f]  ;;  %v76_v43 = vld [vmem:[#allocation2 + $0x11] sm:$0xff] }
  0x30   :  { %s653_s10 = sld [smem:[#allocation6]]  ;;  %s481_s12 = sld [smem:[#allocation5 + $0x1]]  ;;  %v75_v45 = vld [vmem:[#allocation2 + $0x18] sm:$0x7f]  ;;  %vm202_vm2 = vcmask 1046528   ;;  %vm195_vm4 = vcmask 121856  }
  0x31   :  { %s53_s11 = sld [smem:[#allocation5]]  ;;  %s658_s14 = sld [smem:[#allocation5 + $0x9]]  ;;  %v77_v51 = vld [vmem:[#allocation2 + $0x19] sm:$0x7f]  ;;  %vm282_vm5 = vcmask 120832  }
  0x32   :  { %s656_s13 = sld [smem:[#allocation5 + $0x8]]  ;;  %s660_s15 = sld [smem:[#allocation6 + $0x1]] }
  0x33   :  { %s608_s16 = smov 127   ;;  %s664_s17 = sld [smem:[#allocation5 + $0xe]] }
  0x34   :  { %v101_v2 = vstv %s482_s7  ;;  %v114_v6 = vstv %s649_s8  ;;  %s667_s18 = sld [smem:[#allocation5 + $0x6]]  ;;  %s672_s19 = sld [smem:[#allocation5 + $0x7]] }
  0x35   :  { %v103_v4 = vmul.f32 %v101_v2, %v70_v0  ;;  %v102_v5 = vmul.f32 %v101_v2, %v69_v1  ;;  %v296_v7 = vstv %s490_s2  ;;  %v115_v8 = vmul.f32 %v114_v6, %v71_v3  ;;  %s495_s20 = sld [smem:[#allocation5 + $0xf]]  ;;  %s484_s21 = sld [smem:[#allocation5 + $0x4]] }
  0x36   :  { %v297_v9 = vmul.f32 %v296_v7, %v69_v1  ;;  %v309_v10 = vstv %s651_s9  ;;  %v90_v12 = vstv %s653_s10  ;;  %v298_v14 = vmul.f32 %v296_v7, %v70_v0  ;;  %s692_s22 = sld [smem:[#allocation5 + $0x5]]  ;;  %s492_s23 = sld [smem:[#allocation5 + $0xc]] }
  0x37   :  { %108 = vrot.lane.b32.xlu1 %v103_v4, %s608_s16  ;;  %106 = vrot.lane.b32.xlu0 %v102_v5, %s608_s16  ;;  %v310_v13 = vmul.f32 %v309_v10, %v71_v3  ;;  %v91_v15 = vstv %s53_s11  ;;  %v96_v16 = vstv %s481_s12  ;;  %v311_v21 = vmul.f32 %v309_v10, %v72_v11  ;;  %s493_s24 = sld [smem:[#allocation5 + $0xd]] }
  0x38   :  { %v93_v17 = vmul.f32 %v91_v15, %v70_v0  ;;  %v98_v18 = vmul.f32 %v96_v16, %v72_v11  ;;  %v92_v19 = vmul.f32 %v91_v15, %v69_v1  ;;  %v97_v20 = vmul.f32 %v96_v16, %v71_v3 }
  0x39   :  { %v285_v22 = vstv %s660_s15  ;;  %v286_v23 = vstv %s656_s13  ;;  %v291_v24 = vstv %s658_s14  ;;  %v116_v25 = vmul.f32 %v114_v6, %v72_v11 }
  0x3a   :  { %v95_v26 = vadd.f32 %v93_v17, %v90_v12  ;;  %v94_v27 = vadd.f32 %v92_v19, %v90_v12  ;;  %v287_v28 = vmul.f32 %v286_v23, %v69_v1  ;;  %v332_v29 = vstv %s664_s17 }
  0x3b   :  { %119 = vrot.lane.b32.xlu1 %v115_v8, %s608_s16  ;;  %301 = vrot.lane.b32.xlu0 %v297_v9, %s608_s16  ;;  %v292_v30 = vmul.f32 %v291_v24, %v71_v3  ;;  %v288_v31 = vmul.f32 %v286_v23, %v70_v0  ;;  %v293_v32 = vmul.f32 %v291_v24, %v72_v11  ;;  %v137_v34 = vstv %s667_s18 }
  0x3c   :  { %v100_v35 = vadd.f32 %v98_v18, %v95_v26  ;;  %v99_v36 = vadd.f32 %v97_v20, %v94_v27  ;;  %v289_v37 = vadd.f32 %v287_v28, %v285_v22  ;;  %v333_v40 = vmul.f32 %v332_v29, %v74_v33 }
  0x3d   :  { %v290_v38 = vadd.f32 %v288_v31, %v285_v22  ;;  %v138_v41 = vmul.f32 %v137_v34, %v74_v33  ;;  %v150_v44 = vstv %s672_s19  ;;  %v139_v47 = vmul.f32 %v137_v34, %v75_v45 }
  0x3e   :  { %v294_v39 = vadd.f32 %v292_v30, %v289_v37  ;;  %v151_v46 = vmul.f32 %v150_v44, %v76_v43  ;;  %v345_v48 = vstv %s495_s20  ;;  %v334_v50 = vmul.f32 %v332_v29, %v75_v45 }
  0x3f   :  { %314 = vrot.lane.b32.xlu1 %v310_v13, %s608_s16  ;;  %303 = vrot.lane.b32.xlu0 %v298_v14, %s608_s16  ;;  %v295_v42 = vadd.f32 %v293_v32, %v290_v38  ;;  %v346_v49 = vmul.f32 %v345_v48, %v76_v43  ;;  %v347_v52 = vmul.f32 %v345_v48, %v77_v51  ;;  %v127_v56 = vstv %s484_s21 }
  0x40   :  { %v152_v53 = vmul.f32 %v150_v44, %v77_v51  ;;  %v132_v57 = vstv %s692_s22  ;;  %v128_v59 = vmul.f32 %v127_v56, %v74_v33  ;;  %v322_v62 = vstv %s492_s23 }
  0x41   :  { %v133_v0 = vmul.f32 %v132_v57, %v76_v43  ;;  %v327_v1 = vstv %s493_s24  ;;  %v323_v4 = vmul.f32 %v322_v62, %v74_v33  ;;  %v324_v10 = vmul.f32 %v322_v62, %v75_v45 }
  0x42   :  { %v328_v8 = vmul.f32 %v327_v1, %v76_v43  ;;  %v129_v14 = vmul.f32 %v127_v56, %v75_v45  ;;  %v329_v17 = vmul.f32 %v327_v1, %v77_v51  ;;  %v78_v28 = vlaneseq }
  0x43   :  { %316 = vrot.lane.b32.xlu1 %v311_v21, %s608_s16  ;;  %121 = vrot.lane.b32.xlu0 %v116_v25, %s608_s16  ;;  %v134_v21 = vmul.f32 %v132_v57, %v77_v51 }
  0x44   :  { %v79_v32 = vshrl.u32 %v78_v28, 7 }
  0x46   :  { %v80_v34 = vadd.s32 8, %v79_v32 }
  0x47   :  { %337 = vrot.lane.b32.xlu1 %v333_v40, %s608_s16  ;;  %142 = vrot.lane.b32.xlu0 %v138_v41, %s608_s16  ;;  %v609_v40 = vmov 0.0  }
  0x4b   :  { %155 = vrot.lane.b32.xlu1 %v151_v46, %s608_s16  ;;  %144 = vrot.lane.b32.xlu0 %v139_v47, %s608_s16 }
  0x4f   :  { %350 = vrot.lane.b32.xlu1 %v346_v49, %s608_s16  ;;  %339 = vrot.lane.b32.xlu0 %v334_v50, %s608_s16 }
  0x53   :  { %352 = vrot.lane.b32.xlu1 %v347_v52, %s608_s16  ;;  %157 = vrot.lane.b32.xlu0 %v152_v53, %s608_s16 }
  0xa9   :  { %v109_v54 = vpop.permute.xlu1 %108  ;;  %v107_v55 = vpop.permute.xlu0 %106 }
  0xaa   :  { %v112_v58 = vadd.f32 %v107_v55, %v99_v36  ;;  %v113_v11 = vadd.f32 %v109_v54, %v100_v35  ;;  %v82_v35 = vand.u32 127, %v78_v28 }
  0xac   :  { %vm84_vm0 = vcmp.eq.s32.totalorder %v80_v34, %v82_v35  ;;  %vm83_vm1 = vcmp.eq.s32.totalorder %v79_v32, %v82_v35 }
  0xad   :  { %v120_v60 = vpop.permute.xlu1 %119  ;;  %v302_v61 = vpop.permute.xlu0 %301  ;;  %v497_v41 = vsel %vm84_vm0, 1.0, %v609_v40  ;;  %vm532_vm3 = vmpackc.low %vm202_vm2, %vm83_vm1 }
  0xae   :  { %v125_v63 = vadd.f32 %v120_v60, %v112_v58  ;;  %v307_v3 = vadd.f32 %v302_v61, %v294_v39 }
  0xb0   :  { %v130_v2 = vadd.f32 %v128_v59, %v125_v63 }
  0xb1   :  { %v315_v5 = vpop.permute.xlu1 %314  ;;  %v304_v6 = vpop.permute.xlu0 %303 }
  0xb2   :  { %v320_v7 = vadd.f32 %v315_v5, %v307_v3  ;;  %v135_v9 = vadd.f32 %v133_v0, %v130_v2  ;;  %v308_v13 = vadd.f32 %v304_v6, %v295_v42  ;;  %v610_v42 = vmov 1.0  }
  0xb3   :  { %v531_v43 = vpack.c.bf16 %v497_v41, %v610_v42 }
  0xb4   :  { %v325_v12 = vadd.f32 %v323_v4, %v320_v7 }
  0xb5   :  { %v317_v15 = vpop.permute.xlu1 %316  ;;  %v122_v16 = vpop.permute.xlu0 %121  ;;  %533 = vmatprep.subr.msk.bf16.mxu0 %vm532_vm3, %v531_v43  ;;  %539 = vmatprep.subr.msk.bf16.mxu1 %vm532_vm3, %v531_v43 }
  0xb6   :  { %v321_v18 = vadd.f32 %v317_v15, %v308_v13  ;;  %v126_v19 = vadd.f32 %v122_v16, %v113_v11  ;;  %v330_v20 = vadd.f32 %v328_v8, %v325_v12  ;;  %536 = vmatpush3.bf16.msk.msra.mxu0 %vm532_vm3, %v531_v43  ;;  %542 = vmatpush3.bf16.msk.msra.mxu1 %vm532_vm3, %v531_v43 }
  0xb8   :  { %v326_v22 = vadd.f32 %v324_v10, %v321_v18  ;;  %v131_v23 = vadd.f32 %v129_v14, %v126_v19 }
  0xb9   :  { %v338_v24 = vpop.permute.xlu1 %337  ;;  %v143_v25 = vpop.permute.xlu0 %142 }
  0xba   :  { %v136_v26 = vadd.f32 %v134_v21, %v131_v23  ;;  %v331_v27 = vadd.f32 %v329_v17, %v326_v22  ;;  %v148_v29 = vadd.f32 %v143_v25, %v135_v9  ;;  %v343_v36 = vadd.f32 %v338_v24, %v330_v20 }
  0xbd   :  { %v156_v30 = vpop.permute.xlu1 %155  ;;  %v145_v31 = vpop.permute.xlu0 %144 }
  0xbe   :  { %v161_v33 = vadd.f32 %v156_v30, %v148_v29  ;;  %v149_v44 = vadd.f32 %v145_v31, %v136_v26 }
  0xc0   :  { %163 = vxpose.xlu0.b32.start [1/2] (short) (narrow) %v161_v33, 16 }
  0xc1   :  { %v351_v37 = vpop.permute.xlu1 %350  ;;  %v340_v38 = vpop.permute.xlu0 %339 }
  0xc2   :  { %v356_v39 = vadd.f32 %v351_v37, %v343_v36  ;;  %v344_v45 = vadd.f32 %v340_v38, %v331_v27 }
  0xc4   :  { %358 = vxpose.xlu1.b32.start [1/2] (short) (narrow) %v356_v39, 16 }
  0xc5   :  { %v353_v46 = vpop.permute.xlu1 %352  ;;  %v158_v47 = vpop.permute.xlu0 %157 }
  0xc6   :  { %v357_v48 = vadd.f32 %v353_v46, %v344_v45  ;;  %v162_v49 = vadd.f32 %v158_v47, %v149_v44 }
  0xc8   :  { %359 = vxpose.xlu1.b32.end [2/2] (short) (narrow) %v357_v48, 16  ;;  %164 = vxpose.xlu0.b32.end [2/2] (short) (narrow) %v162_v49, 16 }
 0x144   :  { %v374_v50 = vpop.trf.xlu1  ;;  %v179_v51 = vpop.trf.xlu0 }
 0x145   :  { %521 = vmatprep.mubr.msk.f32.mxu0 %vm195_vm4, %v179_v51  ;;  %528 = vmatprep.mubr.msk.f32.mxu1 %vm195_vm4, %v374_v50 }
 0x148   :  { %v375_v52 = vpop.trf.xlu1  ;;  %v180_v53 = vpop.trf.xlu0 }
 0x149   :  { %522 = vmatmul.mubr.msk.f32.vlgmr.msra.gmra.mrb[0].mxu0 %vm195_vm4, %v180_v53  ;;  %529 = vmatmul.mubr.msk.f32.vlgmr.msra.gmra.mrb[0].mxu1 %vm195_vm4, %v375_v52 }
 0x21c   :  { %v523_v54 = vpop.f32.mrb[0].mxu0  ;;  %v530_v55 = vpop.f32.mrb[0].mxu1 }
 0x21d   :  { %283 = vst.msk [vmem:[%s716_s3 + $0x8] sm:$0x7f] %vm282_vm5, %v523_v54  ;;  %508 = vst.msk [vmem:[%s716_s3 + $0x18] sm:$0x7f] %vm282_vm5, %v530_v55  ;;  %v272_v56 = vpop.f32.mrb[1].mxu0  ;;  %v462_v57 = vpop.f32.mrb[1].mxu1 }
 0x21e   :  { %281 = vst.msk [vmem:[%s716_s3] sm:$0xff] %vm195_vm4, %v272_v56  ;;  %507 = vst.msk [vmem:[%s716_s3 + $0x10] sm:$0xff] %vm195_vm4, %v462_v57 }
 0x21f   :  { %478 = vsyncpa [#allocation3], 1 }
 0x220   :  { %479 = vsyncpa [#allocation4], 1 }
 0x221   :  { %480 = vsyncpa [#allocation7], 1 }

</bundles_post_ra>
